<compile_context>
chip_gen: v6e
topology: v6e:2x2x1
jax: 0.10.0
libtpu: 0.0.40
codegen_flags: <defaults>
</compile_context>

<pallas_src>
import jax
import jax.numpy as jnp
from jax.experimental import pallas as pl
from jax.experimental.pallas import tpu as pltpu

IN_DIM = 784
HID_DIM = 256
OUT_DIM = 10
OUT_PAD = 128      # lane-dense class dimension (10 -> 128)
MAX_TB = 512       # batch tile rows; ~5 MiB VMEM worst case (fits every generation)
NEG_BIG = -1e30    # padded-class bias -> exp() == 0 in the softmax (kept in f32)


def _round_up(n, m):
    return ((n + m - 1) // m) * m


def _epilogue_dtype():
    # bf16 bias+sigmoid epilogue on chips with bf16 VPU/EUP (v6e/v7x); f32 on v5e and older.
    try:
        kind = jax.devices()[0].device_kind.lower()
    except Exception:
        return jnp.bfloat16
    for old in ("v2", "v3", "v4", "v5"):
        if old in kind:
            return jnp.float32
    return jnp.bfloat16


def _pick_tile(B):
    Br = _round_up(B, 16)                 # multiple of 16: bf16 packs 16 rows / vreg
    if Br <= 32:
        tb = Br                           # tiny batches: one small tile
    else:
        # prefer >=2 grid steps so v7x's second TensorCore is used; cap at MAX_TB.
        tb = min(MAX_TB, _round_up(pl.cdiv(Br, 2), 16))
    Bp = _round_up(B, tb)
    return tb, Bp


def mlp_kernel(x_ref, w1_ref, b1_ref, w2_ref, b2_ref, o_ref):
    # hidden layer: x @ W1 (bf16 in, f32 MXU accumulation)
    h = jnp.dot(x_ref[...], w1_ref[...], preferred_element_type=jnp.float32)
    # bias + sigmoid epilogue in b1's dtype (bf16 on v6e/v7x, f32 on v5e).
    # sigmoid via tanh: a single EUP push per element (vs exp + reciprocal).
    h = h.astype(b1_ref.dtype) + b1_ref[...]
    h = (jnp.tanh(h * 0.5) * 0.5 + 0.5).astype(jnp.bfloat16)

    # output layer: h @ W2 (bf16 in, f32 acc) + b2 (f32; padded classes carry -1e30)
    logits = jnp.dot(h, w2_ref[...], preferred_element_type=jnp.float32)
    logits = logits + b2_ref[...]

    # numerically stable softmax over the padded class axis
    m = jnp.max(logits, axis=-1, keepdims=True)
    e = jnp.exp(logits - m)                         # padded lanes -> exp(-huge) = 0
    denom = jnp.sum(e, axis=-1, keepdims=True)
    o_ref[...] = (e * (1.0 / denom)).astype(o_ref.dtype)   # exact recip on (tb,1): cheap


def prepare_params(w1, b1, w2, b2, epi_dtype=None):
    """One-time parameter preprocessing (hoisted out of the per-call path).
    w1: (784, 256), b1: (1, 256) or (256,), w2: (256, 10), b2: (1, 10) or (10,).
    Weights are stored [in, out] (== PyTorch x @ W.T)."""
    if epi_dtype is None:
        epi_dtype = _epilogue_dtype()
    w1p = jnp.asarray(w1, jnp.float32).astype(jnp.bfloat16)                   # (784, 256)
    b1p = jnp.asarray(b1, jnp.float32).reshape(1, HID_DIM).astype(epi_dtype)  # (1, 256)
    w2p = jnp.pad(jnp.asarray(w2, jnp.float32).astype(jnp.bfloat16),
                  ((0, 0), (0, OUT_PAD - OUT_DIM)))                           # (256, 128)
    b2p = jnp.full((1, OUT_PAD), NEG_BIG, jnp.float32).at[:, :OUT_DIM].set(
        jnp.asarray(b2, jnp.float32).reshape(1, OUT_DIM))                     # (1, 128) f32
    return w1p, b1p, w2p, b2p


def mlp_forward(x, params):
    """x: (B, 784) f32; params: output of prepare_params. Returns (B, 10) f32 softmax."""
    w1p, b1p, w2p, b2p = params
    B = x.shape[0]
    tb, Bp = _pick_tile(B)
    n_tiles = Bp // tb

    # cast first, then pad: avoids materializing a full (Bp, 784) f32 temp
    xp = x.astype(jnp.bfloat16)
    if Bp != B:
        xp = jnp.pad(xp, ((0, Bp - B), (0, 0)))

    cost = pl.CostEstimate(
        flops=2 * Bp * (IN_DIM * HID_DIM + HID_DIM * OUT_PAD),
        transcendentals=Bp * (HID_DIM + OUT_PAD + 1),
        bytes_accessed=(xp.size * 2 + Bp * OUT_PAD * 4
                        + w1p.size * 2 + w2p.size * 2
                        + b1p.size * b1p.dtype.itemsize + b2p.size * 4),
    )

    out = pl.pallas_call(
        mlp_kernel,
        out_shape=jax.ShapeDtypeStruct((Bp, OUT_PAD), jnp.float32),
        grid_spec=pltpu.PrefetchScalarGridSpec(
            num_scalar_prefetch=0,
            grid=(n_tiles,),
            in_specs=[
                pl.BlockSpec((tb, IN_DIM), lambda i: (i, 0)),        # x tile (pipelined)
                pl.BlockSpec((IN_DIM, HID_DIM), lambda i: (0, 0)),   # W1 resident
                pl.BlockSpec((1, HID_DIM), lambda i: (0, 0)),        # b1 resident
                pl.BlockSpec((HID_DIM, OUT_PAD), lambda i: (0, 0)),  # W2 resident
                pl.BlockSpec((1, OUT_PAD), lambda i: (0, 0)),        # b2 resident
            ],
            out_specs=pl.BlockSpec((tb, OUT_PAD), lambda i: (i, 0)),
        ),
        compiler_params=pltpu.CompilerParams(
            dimension_semantics=("parallel",),
        ),
        cost_estimate=cost,
    )(xp, w1p, b1p, w2p, b2p)

    return out[:B, :OUT_DIM]


if __name__ == "__main__":
    key = jax.random.PRNGKey(0)
    kx, k1, k2, k3, k4 = jax.random.split(key, 5)

    B = 8  # small batch
    x = jax.random.normal(kx, (B, IN_DIM), dtype=jnp.float32)

    # Deterministic parameter init (mimics nn.Linear uniform(-1/sqrt(fan_in), 1/sqrt(fan_in)))
    bound1 = 1.0 / jnp.sqrt(float(IN_DIM))
    w1 = jax.random.uniform(k1, (IN_DIM, HID_DIM), jnp.float32, -bound1, bound1)
    b1 = jax.random.uniform(k2, (1, HID_DIM), jnp.float32, -bound1, bound1)

    bound2 = 1.0 / jnp.sqrt(float(HID_DIM))
    w2 = jax.random.uniform(k3, (HID_DIM, OUT_DIM), jnp.float32, -bound2, bound2)
    b2 = jax.random.uniform(k4, (1, OUT_DIM), jnp.float32, -bound2, bound2)

    # One-time parameter prep (padding + bf16 casts), then jit'd forward.
    params = jax.block_until_ready(prepare_params(w1, b1, w2, b2))
    fwd = jax.jit(mlp_forward)

    out = jax.block_until_ready(fwd(x, params))

    # Reference check in plain JAX (f32 reference; kernel uses bf16 matmul inputs and a
    # bf16/f32 sigmoid epilogue, so tolerances are loosened accordingly).
    h_ref = jax.nn.sigmoid(x @ w1 + b1)
    ref = jax.nn.softmax(h_ref @ w2 + b2, axis=1)
    assert out.shape == (B, OUT_DIM)
    assert jnp.allclose(out, ref, atol=1e-2, rtol=1e-2), float(jnp.max(jnp.abs(out - ref)))
    # rows of softmax output must sum to ~1 (exact reciprocal in the denominator)
    assert jnp.allclose(jnp.sum(out, axis=1), 1.0, atol=2e-3)

    print("KERNEL_OK")
</pallas_src>

<mosaic_0001>
module attributes {stable_mosaic.version = 11 : i64} {
  func.func @mlp_kernel(%arg0: i32, %arg1: memref<16x784xbf16, #tpu.memory_space<vmem>>, %arg2: memref<784x256xbf16, #tpu.memory_space<vmem>>, %arg3: memref<1x256xbf16, #tpu.memory_space<vmem>>, %arg4: memref<256x128xbf16, #tpu.memory_space<vmem>>, %arg5: memref<1x128xf32, #tpu.memory_space<vmem>>, %arg6: memref<16x128xf32, #tpu.memory_space<vmem>>) attributes {dimension_semantics = [#tpu.dimension_semantics<parallel>], iteration_bounds = array<i64: 1>, scalar_prefetch = 0 : i64, scratch_operands = 0 : i64, tpu.core_type = #tpu.core_type<tc>, window_params = [{transform_indices = @transform_0, window_bounds = array<i64: 16, 784>}, {pipeline_mode = #tpu.pipeline_mode<synchronous>, transform_indices = @transform_1, window_bounds = array<i64: 784, 256>}, {pipeline_mode = #tpu.pipeline_mode<synchronous>, transform_indices = @transform_2, window_bounds = array<i64: 1, 256>}, {pipeline_mode = #tpu.pipeline_mode<synchronous>, transform_indices = @transform_3, window_bounds = array<i64: 256, 128>}, {pipeline_mode = #tpu.pipeline_mode<synchronous>, transform_indices = @transform_4, window_bounds = array<i64: 1, 128>}, {transform_indices = @transform_5, window_bounds = array<i64: 16, 128>}]} {
    %c0 = arith.constant 0 : index
    %c0_0 = arith.constant 0 : index
    %0 = vector.load %arg1[%c0, %c0_0] : memref<16x784xbf16, #tpu.memory_space<vmem>>, vector<16x784xbf16>
    %c0_1 = arith.constant 0 : index
    %c0_2 = arith.constant 0 : index
    %1 = vector.load %arg2[%c0_1, %c0_2] : memref<784x256xbf16, #tpu.memory_space<vmem>>, vector<784x256xbf16>
    %cst = arith.constant dense<0.000000e+00> : vector<16x256xf32>
    %2 = tpu.matmul %0, %1, %cst {dimension_numbers = #tpu.dot_dimension_numbers<[1], [0], [0], [1], [0, 0, 1, 1], [], []>} : vector<16x784xbf16>, vector<784x256xbf16>, vector<16x256xf32> -> vector<16x256xf32>
    %3 = arith.truncf %2 : vector<16x256xf32> to vector<16x256xbf16>
    %c0_3 = arith.constant 0 : index
    %c0_4 = arith.constant 0 : index
    %4 = vector.load %arg3[%c0_3, %c0_4] : memref<1x256xbf16, #tpu.memory_space<vmem>>, vector<1x256xbf16>
    %5 = vector.broadcast %4 : vector<1x256xbf16> to vector<16x256xbf16>
    %6 = arith.addf %3, %5 : vector<16x256xbf16>
    %cst_5 = arith.constant 5.000000e-01 : bf16
    %7 = vector.broadcast %cst_5 : bf16 to vector<16x256xbf16>
    %8 = arith.mulf %6, %7 : vector<16x256xbf16>
    %9 = math.tanh %8 : vector<16x256xbf16>
    %cst_6 = arith.constant 5.000000e-01 : bf16
    %10 = vector.broadcast %cst_6 : bf16 to vector<16x256xbf16>
    %11 = arith.mulf %9, %10 : vector<16x256xbf16>
    %cst_7 = arith.constant 5.000000e-01 : bf16
    %12 = vector.broadcast %cst_7 : bf16 to vector<16x256xbf16>
    %13 = arith.addf %11, %12 : vector<16x256xbf16>
    %c0_8 = arith.constant 0 : index
    %c0_9 = arith.constant 0 : index
    %14 = vector.load %arg4[%c0_8, %c0_9] : memref<256x128xbf16, #tpu.memory_space<vmem>>, vector<256x128xbf16>
    %cst_10 = arith.constant dense<0.000000e+00> : vector<16x128xf32>
    %15 = tpu.matmul %13, %14, %cst_10 {dimension_numbers = #tpu.dot_dimension_numbers<[1], [0], [0], [1], [0, 0, 1, 1], [], []>} : vector<16x256xbf16>, vector<256x128xbf16>, vector<16x128xf32> -> vector<16x128xf32>
    %c0_11 = arith.constant 0 : index
    %c0_12 = arith.constant 0 : index
    %16 = vector.load %arg5[%c0_11, %c0_12] : memref<1x128xf32, #tpu.memory_space<vmem>>, vector<1x128xf32>
    %17 = vector.broadcast %16 : vector<1x128xf32> to vector<16x128xf32>
    %18 = arith.addf %15, %17 : vector<16x128xf32>
    %cst_13 = arith.constant dense<0xFF800000> : vector<16xf32>
    %19 = vector.multi_reduction <maximumf>, %18, %cst_13 [1] : vector<16x128xf32> to vector<16xf32>
    %20 = vector.shape_cast %19 : vector<16xf32> to vector<16x1xf32>
    %21 = vector.broadcast %20 : vector<16x1xf32> to vector<16x128xf32>
    %22 = arith.subf %18, %21 : vector<16x128xf32>
    %23 = math.exp %22 : vector<16x128xf32>
    %cst_14 = arith.constant dense<0.000000e+00> : vector<16xf32>
    %24 = vector.multi_reduction <add>, %23, %cst_14 [1] : vector<16x128xf32> to vector<16xf32>
    %25 = vector.shape_cast %24 : vector<16xf32> to vector<16x1xf32>
    %cst_15 = arith.constant 1.000000e+00 : f32
    %26 = vector.broadcast %cst_15 : f32 to vector<16x1xf32>
    %27 = arith.divf %26, %25 : vector<16x1xf32>
    %28 = vector.broadcast %27 : vector<16x1xf32> to vector<16x128xf32>
    %29 = arith.mulf %23, %28 : vector<16x128xf32>
    %c0_16 = arith.constant 0 : index
    %c0_17 = arith.constant 0 : index
    %30 = vector.load %arg6[%c0_16, %c0_17] : memref<16x128xf32, #tpu.memory_space<vmem>>, vector<16x128xf32>
    tpu.vector_store %arg6[%c0_16, %c0_17], %29 {strides = array<i32>} : memref<16x128xf32, #tpu.memory_space<vmem>>, vector<16x128xf32>,
    return
  }
  func.func @transform_0(%arg0: i32) -> (i32, i32) {
    %c0_i32 = arith.constant 0 : i32
    %c0_i32_0 = arith.constant 0 : i32
    return %arg0, %c0_i32 : i32, i32
  }
  func.func @transform_1(%arg0: i32) -> (i32, i32) {
    %c0_i32 = arith.constant 0 : i32
    %c0_i32_0 = arith.constant 0 : i32
    %c0_i32_1 = arith.constant 0 : i32
    return %c0_i32, %c0_i32_0 : i32, i32
  }
  func.func @transform_2(%arg0: i32) -> (i32, i32) {
    %c0_i32 = arith.constant 0 : i32
    %c0_i32_0 = arith.constant 0 : i32
    %c0_i32_1 = arith.constant 0 : i32
    return %c0_i32, %c0_i32_0 : i32, i32
  }
  func.func @transform_3(%arg0: i32) -> (i32, i32) {
    %c0_i32 = arith.constant 0 : i32
    %c0_i32_0 = arith.constant 0 : i32
    %c0_i32_1 = arith.constant 0 : i32
    return %c0_i32, %c0_i32_0 : i32, i32
  }
  func.func @transform_4(%arg0: i32) -> (i32, i32) {
    %c0_i32 = arith.constant 0 : i32
    %c0_i32_0 = arith.constant 0 : i32
    %c0_i32_1 = arith.constant 0 : i32
    return %c0_i32, %c0_i32_0 : i32, i32
  }
  func.func @transform_5(%arg0: i32) -> (i32, i32) {
    %c0_i32 = arith.constant 0 : i32
    %c0_i32_0 = arith.constant 0 : i32
    return %arg0, %c0_i32 : i32, i32
  }
}

</mosaic_0001>

<bundles_post_ra>
// kernel: mlp_forward.1
= control target key start
LH: loop header
LB: loop body
LE: loop exit
PB: predicated region body
PF: predicated region fallthrough
CT: control target
= control target key end

     0   :  { %10 = vsyncpa [#allocation3], 0  ;;  %s1454_s18 = smov [#allocation2]   ;;  %s1573_s0 = inlined_call_operand.vmem [shape: bf16[16,784], index: 0, kind: input, shape index: {}]   ;;  %s1574_s1 = inlined_call_operand.hbm [shape: bf16[784,256], index: 1, kind: input, shape index: {}]   ;;  %s1575_s2 = inlined_call_operand.vmem [shape: bf16[1,256], index: 2, kind: input, shape index: {}]   ;;  %s1576_s3 = inlined_call_operand.vmem [shape: bf16[256,128], index: 3, kind: input, shape index: {}]   ;;  %s1577_s4 = inlined_call_operand.vmem [shape: f32[1,128], index: 4, kind: input, shape index: {}]   ;;  %s1578_s5 = inlined_call_operand.vmem [shape: f32[16,128], index: 5, kind: output, shape index: {}]  }
   0x1   :  { %s18_s19 = sshll.u32 %s1454_s18, 4  ;;  %s19_s19 = int_to_ptr.vmem [resolvable:$true] %s18_s19 }
   0x2   :  { %s1440_s20 = scalar_lea.vmem %s19_s19, 12544  ;;  %p1445_p1 = scmp.lt.s32.totalorder %s19_s19, %s19_s19 }
   0x3   :  { %p1441_p0 = scmp.ne.s32.totalorder %s19_s19, %s1440_s20  ;;  %p1446_p2 = scmp.lt.s32.totalorder %s1440_s20, %s1440_s20 }
   0x5   :  { %p1447_p3 = por %p1446_p2, %p1445_p1 }
   0x7   :  { %p1448_p4 = pnand %p1447_p3, %p1441_p0 }
   0x9   :  { %1451 = shalt.err (!%p1448_p4)
}
   0xa   :  { %s1455_s21 = smov 128   ;;  %s1456_s22 = smov 8  }
   0xb   :  { %24 = dma.hbm_to_vmem [thread:$0]  %s1574_s1, 12544, %s19_s19, [#allocation3], %s1455_s21, %s1455_s21, %s1456_s22  }
   0xc   :  { %1452 = dma.done.wait [#allocation3], 12544  }
   0xd   :  { %1453 = vsyncadd [#allocation3], 4294954752  ;;  %v1247_v0 = vld [vmem:[#allocation2 + $0x74] ss:$8 sps:$4 sm:$0xff]   ;;  %v1251_v2 = vld [vmem:[#allocation2 + $0x70] ss:$8 sps:$4 sm:$0xff]  }
   0xe   :  { %v1249_v1 = vld [vmem:[#allocation2 + $0x174] ss:$8 sps:$4 sm:$0xff]   ;;  %671 = vmatprep.subr.bf16.mxu0 %v1247_v0  ;;  %v1252_v3 = vld [vmem:[#allocation2 + $0x170] ss:$8 sps:$4 sm:$0xff]   ;;  %v1253_v4 = vld [vmem:[#allocation2 + $0x64] ss:$8 sps:$4 sm:$0xff]  }
   0xf   :  { %714 = vmatprep.subr.bf16.mxu1 %v1249_v1  ;;  %672 = vmatpush1.bf16.msra.mxu0 %v1251_v2  ;;  %v1255_v5 = vld [vmem:[#allocation2 + $0x164] ss:$8 sps:$4 sm:$0xff]   ;;  %v1257_v6 = vld [vmem:[#allocation2 + $0x60] ss:$8 sps:$4 sm:$0xff]   ;;  %v1259_v8 = vld [vmem:[#allocation2 + $0x54] ss:$8 sps:$4 sm:$0xff]  }
  0x10   :  { %715 = vmatpush1.bf16.msra.mxu1 %v1252_v3  ;;  %673 = vmatprep.subr.bf16.mxu0 %v1253_v4  ;;  %v1258_v7 = vld [vmem:[#allocation2 + $0x160] ss:$8 sps:$4 sm:$0xff]   ;;  %v1261_v9 = vld [vmem:[#allocation2 + $0x154] ss:$8 sps:$4 sm:$0xff]   ;;  %v1263_v10 = vld [vmem:[#allocation2 + $0x50] ss:$8 sps:$4 sm:$0xff]  }
  0x11   :  { %716 = vmatprep.subr.bf16.mxu1 %v1255_v5  ;;  %v1264_v11 = vld [vmem:[#allocation2 + $0x150] ss:$8 sps:$4 sm:$0xff]   ;;  %v1265_v12 = vld [vmem:[#allocation2 + $0x44] ss:$8 sps:$4 sm:$0xff]   ;;  %v1269_v14 = vld [vmem:[#allocation2 + $0x40] ss:$8 sps:$4 sm:$0xff]  }
  0x12   :  { %v1267_v13 = vld [vmem:[#allocation2 + $0x144] ss:$8 sps:$4 sm:$0xff]   ;;  %v1270_v15 = vld [vmem:[#allocation2 + $0x140] ss:$8 sps:$4 sm:$0xff]   ;;  %v1271_v16 = vld [vmem:[#allocation2 + $0x34] ss:$8 sps:$4 sm:$0xff]  }
  0x13   :  { %674 = vmatpush1.bf16.msra.mxu0 %v1257_v6  ;;  %v1273_v17 = vld [vmem:[#allocation2 + $0x134] ss:$8 sps:$4 sm:$0xff]   ;;  %v1275_v18 = vld [vmem:[#allocation2 + $0x30] ss:$8 sps:$4 sm:$0xff]   ;;  %v1277_v20 = vld [vmem:[#allocation2 + $0x24] ss:$8 sps:$4 sm:$0xff]  }
  0x14   :  { %717 = vmatpush1.bf16.msra.mxu1 %v1258_v7  ;;  %675 = vmatprep.subr.bf16.mxu0 %v1259_v8  ;;  %v1276_v19 = vld [vmem:[#allocation2 + $0x130] ss:$8 sps:$4 sm:$0xff]   ;;  %v1279_v21 = vld [vmem:[#allocation2 + $0x124] ss:$8 sps:$4 sm:$0xff]   ;;  %v1281_v22 = vld [vmem:[#allocation2 + $0x20] ss:$8 sps:$4 sm:$0xff]  }
  0x15   :  { %718 = vmatprep.subr.bf16.mxu1 %v1261_v9  ;;  %v1282_v23 = vld [vmem:[#allocation2 + $0x120] ss:$8 sps:$4 sm:$0xff]   ;;  %v1283_v24 = vld [vmem:[#allocation2 + $0x14] ss:$8 sps:$4 sm:$0xff]   ;;  %v1287_v26 = vld [vmem:[#allocation2 + $0x10] ss:$8 sps:$4 sm:$0xff]  }
  0x16   :  { %v1285_v25 = vld [vmem:[#allocation2 + $0x114] ss:$8 sps:$4 sm:$0xff]   ;;  %v1288_v27 = vld [vmem:[#allocation2 + $0x110] ss:$8 sps:$4 sm:$0xff]   ;;  %v1289_v28 = vld [vmem:[#allocation2 + $0x4] ss:$8 sps:$4 sm:$0xff]  }
  0x17   :  { %676 = vmatpush1.bf16.msra.mxu0 %v1263_v10  ;;  %v1291_v29 = vld [vmem:[#allocation2 + $0x104] ss:$8 sps:$4 sm:$0xff]   ;;  %v1293_v30 = vld [vmem:[#allocation2] ss:$8 sps:$4 sm:$0xff]   ;;  %v1295_v32 = vld [vmem:[#allocation2 + $0xf4] ss:$8 sps:$4 sm:$0xff]  }
  0x18   :  { %719 = vmatpush1.bf16.msra.mxu1 %v1264_v11  ;;  %677 = vmatprep.subr.bf16.mxu0 %v1265_v12  ;;  %v1294_v31 = vld [vmem:[#allocation2 + $0x100] ss:$8 sps:$4 sm:$0xff]   ;;  %v1297_v33 = vld [vmem:[#allocation2 + $0x1f4] ss:$8 sps:$4 sm:$0xff]   ;;  %v1299_v34 = vld [vmem:[#allocation2 + $0xf0] ss:$8 sps:$4 sm:$0xff]  }
  0x19   :  { %720 = vmatprep.subr.bf16.mxu1 %v1267_v13  ;;  %v1300_v35 = vld [vmem:[#allocation2 + $0x1f0] ss:$8 sps:$4 sm:$0xff]   ;;  %v1301_v36 = vld [vmem:[#allocation2 + $0xe4] ss:$8 sps:$4 sm:$0xff]   ;;  %v1305_v38 = vld [vmem:[#allocation2 + $0xe0] ss:$8 sps:$4 sm:$0xff]  }
  0x1a   :  { %v1303_v37 = vld [vmem:[#allocation2 + $0x1e4] ss:$8 sps:$4 sm:$0xff]   ;;  %v1306_v39 = vld [vmem:[#allocation2 + $0x1e0] ss:$8 sps:$4 sm:$0xff]   ;;  %v1307_v40 = vld [vmem:[#allocation2 + $0xd4] ss:$8 sps:$4 sm:$0xff]  }
  0x1b   :  { %678 = vmatpush1.bf16.msra.mxu0 %v1269_v14  ;;  %v1309_v41 = vld [vmem:[#allocation2 + $0x1d4] ss:$8 sps:$4 sm:$0xff]   ;;  %v1311_v42 = vld [vmem:[#allocation2 + $0xd0] ss:$8 sps:$4 sm:$0xff]   ;;  %v1313_v44 = vld [vmem:[#allocation2 + $0xc4] ss:$8 sps:$4 sm:$0xff]  }
  0x1c   :  { %721 = vmatpush1.bf16.msra.mxu1 %v1270_v15  ;;  %679 = vmatprep.subr.bf16.mxu0 %v1271_v16  ;;  %v1312_v43 = vld [vmem:[#allocation2 + $0x1d0] ss:$8 sps:$4 sm:$0xff]   ;;  %v1315_v45 = vld [vmem:[#allocation2 + $0x1c4] ss:$8 sps:$4 sm:$0xff]   ;;  %v1317_v46 = vld [vmem:[#allocation2 + $0xc0] ss:$8 sps:$4 sm:$0xff]  }
  0x1d   :  { %722 = vmatprep.subr.bf16.mxu1 %v1273_v17  ;;  %v1318_v47 = vld [vmem:[#allocation2 + $0x1c0] ss:$8 sps:$4 sm:$0xff]   ;;  %v1319_v48 = vld [vmem:[#allocation2 + $0xb4] ss:$8 sps:$4 sm:$0xff]   ;;  %v1323_v52 = vld [vmem:[#allocation2 + $0xb0] ss:$8 sps:$4 sm:$0xff]  }
  0x1e   :  { %v1345_v49 = vld [vmem:[%s1573_s0 + $0x4] ss:$28 sps:$4 sm:$0xff]   ;;  %v1321_v50 = vld [vmem:[#allocation2 + $0x1b4] ss:$8 sps:$4 sm:$0xff]   ;;  %v1348_v51 = vld [vmem:[%s1573_s0 + $0xc] ss:$28 sps:$4 sm:$0xff]  }
  0x1f   :  { %680 = vmatpush1.bf16.msra.mxu0 %v1275_v18  ;;  %703 = vmatprep.mubr.bf16.mxu0 %v1345_v49  ;;  %v1324_v53 = vld [vmem:[#allocation2 + $0x1b0] ss:$8 sps:$4 sm:$0xff]   ;;  %v1325_v54 = vld [vmem:[#allocation2 + $0xa4] ss:$8 sps:$4 sm:$0xff]   ;;  %v1329_v56 = vld [vmem:[#allocation2 + $0xa0] ss:$8 sps:$4 sm:$0xff]  }
  0x20   :  { %723 = vmatpush1.bf16.msra.mxu1 %v1276_v19  ;;  %681 = vmatprep.subr.bf16.mxu0 %v1277_v20  ;;  %v1327_v55 = vld [vmem:[#allocation2 + $0x1a4] ss:$8 sps:$4 sm:$0xff]   ;;  %v1330_v57 = vld [vmem:[#allocation2 + $0x1a0] ss:$8 sps:$4 sm:$0xff]   ;;  %v1331_v58 = vld [vmem:[#allocation2 + $0x94] ss:$8 sps:$4 sm:$0xff]  }
  0x21   :  { %724 = vmatprep.subr.bf16.mxu1 %v1279_v21  ;;  %746 = vmatprep.mubr.bf16.mxu1 %v1348_v51  ;;  %v1333_v59 = vld [vmem:[#allocation2 + $0x194] ss:$8 sps:$4 sm:$0xff]   ;;  %v1335_v60 = vld [vmem:[#allocation2 + $0x90] ss:$8 sps:$4 sm:$0xff]   ;;  %v1337_v62 = vld [vmem:[#allocation2 + $0x84] ss:$8 sps:$4 sm:$0xff]  }
  0x22   :  { %v1336_v61 = vld [vmem:[#allocation2 + $0x190] ss:$8 sps:$4 sm:$0xff]   ;;  %v1339_v63 = vld [vmem:[#allocation2 + $0x184] ss:$8 sps:$4 sm:$0xff]   ;;  %v1341_v0 = vld [vmem:[#allocation2 + $0x80] ss:$8 sps:$4 sm:$0xff]  }
  0x23   :  { %682 = vmatpush1.bf16.msra.mxu0 %v1281_v22  ;;  %v1342_v1 = vld [vmem:[#allocation2 + $0x180] ss:$8 sps:$4 sm:$0xff]   ;;  %v1351_v2 = vld [vmem:[#allocation2 + $0x274] ss:$8 sps:$4 sm:$0xff]   ;;  %v1349_v5 = vld [vmem:[#allocation2 + $0x270] ss:$8 sps:$4 sm:$0xff]  }
  0x24   :  { %725 = vmatpush1.bf16.msra.mxu1 %v1282_v23  ;;  %683 = vmatprep.subr.bf16.mxu0 %v1283_v24  ;;  %v1343_v3 = vld [vmem:[%s1573_s0] ss:$28 sps:$4 sm:$0xff]   ;;  %v1346_v4 = vld [vmem:[%s1573_s0 + $0x8] ss:$28 sps:$4 sm:$0xff]   ;;  %v1400_v11 = vld [vmem:[%s1573_s0 + $0x18] ss:$28 sps:$4 sm:$0xff]  }
  0x25   :  { %726 = vmatprep.subr.bf16.mxu1 %v1285_v25  ;;  %v1354_v6 = vld [vmem:[#allocation2 + $0x264] ss:$8 sps:$4 sm:$0xff]   ;;  %v1394_v7 = vld [vmem:[#allocation2 + $0x300] ss:$8 sps:$4 sm:$0xff]   ;;  %v1357_v10 = vld [vmem:[#allocation2 + $0x254] ss:$8 sps:$4 sm:$0xff]  }
  0x26   :  { %v1396_v8 = vld [vmem:[#allocation2 + $0x304] ss:$8 sps:$4 sm:$0xff]   ;;  %v1352_v9 = vld [vmem:[#allocation2 + $0x260] ss:$8 sps:$4 sm:$0xff]   ;;  %vm667_vm0 = vcmask 130048   ;;  %v1457_v13 = vmov 0  }
  0x27   :  { %684 = vmatpush1.bf16.msra.mxu0 %v1287_v26  ;;  %v1355_v12 = vld [vmem:[#allocation2 + $0x250] ss:$8 sps:$4 sm:$0xff]   ;;  %v1360_v15 = vld [vmem:[#allocation2 + $0x244] ss:$8 sps:$4 sm:$0xff]   ;;  %v1358_v16 = vld [vmem:[#allocation2 + $0x240] ss:$8 sps:$4 sm:$0xff]  }
  0x28   :  { %727 = vmatpush1.bf16.msra.mxu1 %v1288_v27  ;;  %685 = vmatprep.subr.bf16.mxu0 %v1289_v28  ;;  %v1403_v14 = vld [vmem:[%s1573_s0 + $0x14] ss:$28 sps:$4 sm:$0xff]   ;;  %v1366_v19 = vld [vmem:[#allocation2 + $0x224] ss:$8 sps:$4 sm:$0xff]   ;;  %v1364_v20 = vld [vmem:[#allocation2 + $0x220] ss:$8 sps:$4 sm:$0xff]  }
  0x29   :  { %728 = vmatprep.subr.bf16.mxu1 %v1291_v29  ;;  %v1363_v17 = vld [vmem:[#allocation2 + $0x234] ss:$8 sps:$4 sm:$0xff]   ;;  %v1361_v18 = vld [vmem:[#allocation2 + $0x230] ss:$8 sps:$4 sm:$0xff]   ;;  %v1372_v23 = vld [vmem:[#allocation2 + $0x204] ss:$8 sps:$4 sm:$0xff]  }
  0x2a   :  { %v1369_v21 = vld [vmem:[#allocation2 + $0x214] ss:$8 sps:$4 sm:$0xff]   ;;  %v1367_v22 = vld [vmem:[#allocation2 + $0x210] ss:$8 sps:$4 sm:$0xff]   ;;  %v1370_v24 = vld [vmem:[#allocation2 + $0x200] ss:$8 sps:$4 sm:$0xff]  }
  0x2b   :  { %686 = vmatpush1.bf16.msra.mxu0 %v1293_v30  ;;  %v1375_v25 = vld [vmem:[#allocation2 + $0x2f4] ss:$8 sps:$4 sm:$0xff]   ;;  %v1373_v26 = vld [vmem:[#allocation2 + $0x2f0] ss:$8 sps:$4 sm:$0xff]   ;;  %v1378_v27 = vld [vmem:[#allocation2 + $0x2e4] ss:$8 sps:$4 sm:$0xff]  }
  0x2c   :  { %729 = vmatpush1.bf16.msra.mxu1 %v1294_v31  ;;  %687 = vmatprep.subr.bf16.mxu0 %v1295_v32  ;;  %v1376_v28 = vld [vmem:[#allocation2 + $0x2e0] ss:$8 sps:$4 sm:$0xff]   ;;  %v1381_v29 = vld [vmem:[#allocation2 + $0x2d4] ss:$8 sps:$4 sm:$0xff]   ;;  %v1379_v30 = vld [vmem:[#allocation2 + $0x2d0] ss:$8 sps:$4 sm:$0xff]  }
  0x2d   :  { %730 = vmatprep.subr.bf16.mxu1 %v1297_v33  ;;  %v1384_v31 = vld [vmem:[#allocation2 + $0x2c4] ss:$8 sps:$4 sm:$0xff]   ;;  %v1382_v32 = vld [vmem:[#allocation2 + $0x2c0] ss:$8 sps:$4 sm:$0xff]   ;;  %v1387_v33 = vld [vmem:[#allocation2 + $0x2b4] ss:$8 sps:$4 sm:$0xff]  }
  0x2e   :  { %v1411_v49 = vld [vmem:[%s1576_s3 + $0x20] sm:$0xff]   ;;  %v1413_v51 = vld [vmem:[%s1576_s3 + $0x18] sm:$0xff]  }
  0x2f   :  { %688 = vmatpush2.bf16.msra.mxu0 %v1299_v34  ;;  %v1385_v34 = vld [vmem:[#allocation2 + $0x2b0] ss:$8 sps:$4 sm:$0xff]  }
  0x30   :  { %731 = vmatpush2.bf16.msra.mxu1 %v1300_v35  ;;  %689 = vmatprep.subr.bf16.mxu0 %v1301_v36  ;;  %v1390_v35 = vld [vmem:[#allocation2 + $0x2a4] ss:$8 sps:$4 sm:$0xff]   ;;  %v1388_v36 = vld [vmem:[#allocation2 + $0x2a0] ss:$8 sps:$4 sm:$0xff]  }
  0x31   :  { %732 = vmatprep.subr.bf16.mxu1 %v1303_v37  ;;  %v1393_v37 = vld [vmem:[#allocation2 + $0x294] ss:$8 sps:$4 sm:$0xff]  }
  0x33   :  { %690 = vmatpush2.bf16.msra.mxu0 %v1305_v38  ;;  %v1391_v38 = vld [vmem:[#allocation2 + $0x290] ss:$8 sps:$4 sm:$0xff]  }
  0x34   :  { %733 = vmatpush2.bf16.msra.mxu1 %v1306_v39  ;;  %691 = vmatprep.subr.bf16.mxu0 %v1307_v40  ;;  %v1399_v39 = vld [vmem:[#allocation2 + $0x284] ss:$8 sps:$4 sm:$0xff]   ;;  %v1397_v40 = vld [vmem:[#allocation2 + $0x280] ss:$8 sps:$4 sm:$0xff]  }
  0x35   :  { %734 = vmatprep.subr.bf16.mxu1 %v1309_v41  ;;  %v1401_v41 = vld [vmem:[%s1573_s0 + $0x10] ss:$28 sps:$4 sm:$0xff]  }
  0x37   :  { %692 = vmatpush2.bf16.msra.mxu0 %v1311_v42  ;;  %v1404_v42 = vld [vmem:[%s1576_s3 + $0x78] sm:$0xff]  }
  0x38   :  { %735 = vmatpush2.bf16.msra.mxu1 %v1312_v43  ;;  %693 = vmatprep.subr.bf16.mxu0 %v1313_v44  ;;  %v1405_v43 = vld [vmem:[%s1576_s3 + $0x38] sm:$0xff]   ;;  %v1406_v44 = vld [vmem:[%s1576_s3 + $0x70] sm:$0xff]  }
  0x39   :  { %736 = vmatprep.subr.bf16.mxu1 %v1315_v45  ;;  %v1407_v45 = vld [vmem:[%s1576_s3 + $0x30] sm:$0xff]  }
  0x3b   :  { %694 = vmatpush2.bf16.msra.mxu0 %v1317_v46  ;;  %v1408_v46 = vld [vmem:[%s1576_s3 + $0x68] sm:$0xff]  }
  0x3c   :  { %737 = vmatpush2.bf16.msra.mxu1 %v1318_v47  ;;  %695 = vmatprep.subr.bf16.mxu0 %v1319_v48  ;;  %v1409_v47 = vld [vmem:[%s1576_s3 + $0x28] sm:$0xff]   ;;  %v1410_v48 = vld [vmem:[%s1576_s3 + $0x60] sm:$0xff]  }
  0x3d   :  { %738 = vmatprep.subr.bf16.mxu1 %v1321_v50  ;;  %v1412_v50 = vld [vmem:[%s1576_s3 + $0x58] sm:$0xff]  }
  0x3f   :  { %696 = vmatpush2.bf16.msra.mxu0 %v1323_v52  ;;  %v1414_v52 = vld [vmem:[%s1576_s3 + $0x50] sm:$0xff]  }
  0x40   :  { %739 = vmatpush2.bf16.msra.mxu1 %v1324_v53  ;;  %697 = vmatprep.subr.bf16.mxu0 %v1325_v54  ;;  %v1415_v53 = vld [vmem:[%s1576_s3 + $0x10] sm:$0xff]   ;;  %v1416_v54 = vld [vmem:[%s1576_s3 + $0x48] sm:$0xff]  }
  0x41   :  { %740 = vmatprep.subr.bf16.mxu1 %v1327_v55  ;;  %v1417_v55 = vld [vmem:[%s1576_s3 + $0x8] sm:$0xff]  }
  0x43   :  { %698 = vmatpush2.bf16.msra.mxu0 %v1329_v56  ;;  %v1418_v56 = vld [vmem:[%s1576_s3 + $0x40] sm:$0xff]  }
  0x44   :  { %741 = vmatpush2.bf16.msra.mxu1 %v1330_v57  ;;  %699 = vmatprep.subr.bf16.mxu0 %v1331_v58  ;;  %v1419_v57 = vld [vmem:[%s1576_s3] sm:$0xff]  }
  0x45   :  { %742 = vmatprep.subr.bf16.mxu1 %v1333_v59 }
  0x47   :  { %700 = vmatpush2.bf16.msra.mxu0 %v1335_v60 }
  0x48   :  { %743 = vmatpush2.bf16.msra.mxu1 %v1336_v61  ;;  %701 = vmatprep.subr.bf16.mxu0 %v1337_v62  ;;  %v1458_v61 = vmov 1966171168  }
  0x49   :  { %744 = vmatprep.subr.bf16.mxu1 %v1339_v63  ;;  %v856_v62 = vunpack.c.l.s4 %v1458_v61  ;;  %v858_v63 = vlaneseq }
  0x4b   :  { %702 = vmatpush2.bf16.msra.mxu0 %v1341_v0 }
  0x4c   :  { %745 = vmatpush2.bf16.msra.mxu1 %v1342_v1  ;;  %757 = vmatprep.subr.bf16.mxu0 %v1351_v2  ;;  %v857_v2 = vunpack.c.0.s8 %v856_v62 }
  0x4d   :  { %814 = vmatprep.subr.bf16.mxu1 %v1396_v8 }
  0x4e   :  { %704 = vmatmul.mubr.bf16.vlgmr.msra.gmra.mxu0 %v1343_v3  ;;  %v859_v3 = vshrl.u32 %v858_v63, 7 }
  0x4f   :  { %747 = vmatmul.mubr.bf16.vlgmr.msra.gmra.mxu1 %v1346_v4  ;;  %758 = vmatpush1.bf16.msra.mxu0 %v1349_v5 }
  0x50   :  { %759 = vmatprep.subr.bf16.mxu0 %v1354_v6  ;;  %815 = vmatpush1.bf16.msra.mxu1 %v1394_v7  ;;  %v1202_v6 = vld.sshfl [vmem:[%s1575_s2] sm:$0x11 pattern:$0x75316420]  ;;  %v860_v7 = vsub.s32 %v857_v2, %v859_v3 }
  0x51   :  { %832 = vmatprep.mubr.bf16.mxu1 %v1457_v13  ;;  %789 = vmatprep.mubr.bf16.mxu0 %v1403_v14 }
  0x52   :  { %1220 = vmatprep.subr.bf16.mxu1 %v1404_v42 }
  0x53   :  { %760 = vmatpush1.bf16.msra.mxu0 %v1352_v9  ;;  %v854_v9 = vcombine.high %v1202_v6, %v1202_v6 }
  0x54   :  { %761 = vmatprep.subr.bf16.mxu0 %v1357_v10 }
  0x57   :  { %1201 = vmatmul.mubr.msk.bf16.vlgmr.msra.gmra.mxu1 %vm667_vm0, %v1400_v11  ;;  %762 = vmatpush1.bf16.msra.mxu0 %v1355_v12  ;;  %v861_v11 = vrot.slane %v1202_v6, %v860_v7 }
  0x58   :  { %763 = vmatprep.subr.bf16.mxu0 %v1360_v15  ;;  %1221 = vmatpush3.bf16.msra.mxu1 %v1405_v43  ;;  %v868_v15 = vrot.slane %v854_v9, %v860_v7 }
  0x59   :  { %1222 = vmatprep.subr.bf16.mxu1 %v1406_v44 }
  0x5b   :  { %764 = vmatpush1.bf16.msra.mxu0 %v1358_v16 }
  0x5c   :  { %765 = vmatprep.subr.bf16.mxu0 %v1363_v17  ;;  %1223 = vmatpush3.bf16.msra.mxu1 %v1407_v45  ;;  %v870_v17 = vpack.i.b16 %v861_v11, %v861_v11 }
  0x5d   :  { %1224 = vmatprep.subr.bf16.mxu1 %v1408_v46 }
  0x5f   :  { %766 = vmatpush1.bf16.msra.mxu0 %v1361_v18 }
  0x60   :  { %767 = vmatprep.subr.bf16.mxu0 %v1366_v19  ;;  %1225 = vmatpush3.bf16.msra.mxu1 %v1409_v47 }
  0x61   :  { %1226 = vmatprep.subr.bf16.mxu1 %v1410_v48 }
  0x63   :  { %768 = vmatpush1.bf16.msra.mxu0 %v1364_v20 }
  0x64   :  { %769 = vmatprep.subr.bf16.mxu0 %v1369_v21  ;;  %1227 = vmatpush3.bf16.msra.mxu1 %v1411_v49  ;;  %v874_v21 = vsub.s32 0, %v859_v3 }
  0x65   :  { %1228 = vmatprep.subr.bf16.mxu1 %v1412_v50 }
  0x67   :  { %770 = vmatpush1.bf16.msra.mxu0 %v1367_v22 }
  0x68   :  { %771 = vmatprep.subr.bf16.mxu0 %v1372_v23  ;;  %1229 = vmatpush3.bf16.msra.mxu1 %v1413_v51  ;;  %v1203_v51 = vld [vmem:[%s1577_s4] ss:$0 sm:$0xff] }
  0x69   :  { %1230 = vmatprep.subr.bf16.mxu1 %v1414_v52 }
  0x6b   :  { %772 = vmatpush1.bf16.msra.mxu0 %v1370_v24 }
  0x6c   :  { %773 = vmatprep.subr.bf16.mxu0 %v1375_v25  ;;  %1231 = vmatpush3.bf16.msra.mxu1 %v1415_v53 }
  0x6d   :  { %1232 = vmatprep.subr.bf16.mxu1 %v1416_v54 }
  0x6f   :  { %774 = vmatpush2.bf16.msra.mxu0 %v1373_v26 }
  0x70   :  { %775 = vmatprep.subr.bf16.mxu0 %v1378_v27  ;;  %1233 = vmatpush3.bf16.msra.mxu1 %v1417_v55  ;;  %v877_v27 = vpack.i.b16 %v868_v15, %v868_v15 }
  0x71   :  { %1234 = vmatprep.subr.bf16.mxu1 %v1418_v56 }
  0x73   :  { %776 = vmatpush2.bf16.msra.mxu0 %v1376_v28 }
  0x74   :  { %777 = vmatprep.subr.bf16.mxu0 %v1381_v29  ;;  %1235 = vmatpush3.bf16.msra.mxu1 %v1419_v57 }
  0x77   :  { %778 = vmatpush2.bf16.msra.mxu0 %v1379_v30 }
  0x78   :  { %779 = vmatprep.subr.bf16.mxu0 %v1384_v31  ;;  %v875_v31 = vrot.slane %v870_v17, %v874_v21 }
  0x7b   :  { %780 = vmatpush2.bf16.msra.mxu0 %v1382_v32 }
  0x7c   :  { %781 = vmatprep.subr.bf16.mxu0 %v1387_v33 }
  0x7f   :  { %782 = vmatpush2.bf16.msra.mxu0 %v1385_v34 }
  0x80   :  { %783 = vmatprep.subr.bf16.mxu0 %v1390_v35 }
  0x83   :  { %784 = vmatpush2.bf16.msra.mxu0 %v1388_v36 }
  0x84   :  { %785 = vmatprep.subr.bf16.mxu0 %v1393_v37  ;;  %v882_v37 = vrot.slane %v877_v27, %v874_v21 }
  0x87   :  { %786 = vmatpush2.bf16.msra.mxu0 %v1391_v38 }
  0x88   :  { %787 = vmatprep.subr.bf16.mxu0 %v1399_v39 }
  0x8b   :  { %788 = vmatpush2.bf16.msra.mxu0 %v1397_v40 }
  0x8e   :  { %790 = vmatmul.mubr.bf16.vlgmr.msra.gmra.mxu0 %v1401_v41 }
 0x10e   :  { %v705_v59 = vpop.f32.mrf.mxu0 }
 0x10f   :  { %v748_v58 = vpop.f32.mrf.mxu1 }
 0x110   :  { %v707_v0 = vpop.f32.mrf.mxu0  ;;  %v749_v14 = vadd.f32 %v748_v58, %v705_v59 }
 0x111   :  { %v750_v60 = vpop.f32.mrf.mxu1 }
 0x112   :  { %v709_v4 = vpop.f32.mrf.mxu0  ;;  %v751_v18 = vadd.f32 %v750_v60, %v707_v0 }
 0x113   :  { %v752_v1 = vpop.f32.mrf.mxu1 }
 0x114   :  { %v711_v10 = vpop.f32.mrf.mxu0  ;;  %v753_v19 = vadd.f32 %v752_v1, %v709_v4 }
 0x115   :  { %v754_v5 = vpop.f32.mrf.mxu1 }
 0x116   :  { %v755_v24 = vadd.f32 %v754_v5, %v711_v10 }
 0x117   :  { %v834_v8 = vpop.f32.mrf.mxu1 }
 0x119   :  { %v836_v12 = vpop.f32.mrf.mxu1 }
 0x11b   :  { %v838_v22 = vpop.f32.mrf.mxu1 }
 0x11d   :  { %v840_v33 = vpop.f32.mrf.mxu1 }
 0x14e   :  { %v791_v13 = vpop.f32.mrf.mxu0 }
 0x14f   :  { %v792_v20 = vadd.f32 %v791_v13, %v749_v14 }
 0x150   :  { %v793_v16 = vpop.f32.mrf.mxu0 }
 0x151   :  { %v794_v25 = vadd.f32 %v793_v16, %v751_v18  ;;  %v835_v29 = vadd.f32 %v834_v8, %v792_v20 }
 0x152   :  { %v795_v23 = vpop.f32.mrf.mxu0 }
 0x153   :  { %v796_v26 = vadd.f32 %v795_v23, %v753_v19  ;;  %v837_v34 = vadd.f32 %v836_v12, %v794_v25 }
 0x154   :  { %v797_v28 = vpop.f32.mrf.mxu0 }
 0x155   :  { %v839_v30 = vadd.f32 %v838_v22, %v796_v26  ;;  %v798_v32 = vadd.f32 %v797_v28, %v755_v24 }
 0x157   :  { %v843_v35 = vpack.c.bf16 %v839_v30, %v835_v29  ;;  %v841_v36 = vadd.f32 %v840_v33, %v798_v32 }
 0x159   :  { %v883_v38 = vadd.bf16 %v875_v31, %v843_v35  ;;  %v844_v39 = vpack.c.bf16 %v841_v36, %v837_v34 }
 0x15b   :  { %v885_v40 = vmul.bf16 1056980736, %v883_v38  ;;  %v884_v41 = vadd.bf16 %v882_v37, %v844_v39 }
 0x15d   :  { %1420 = vtanh.bf16 %v885_v40  ;;  %v886_v42 = vmul.bf16 1056980736, %v884_v41 }
 0x15f   :  { %1422 = vtanh.bf16 %v886_v42 }
 0x16b   :  { %v1421_v43 = vpop.eup %1420 }
 0x16c   :  { %v889_v45 = vmul.bf16 1056980736, %v1421_v43 }
 0x16d   :  { %v1423_v44 = vpop.eup %1422 }
 0x16e   :  { %v890_v46 = vmul.bf16 1056980736, %v1423_v44  ;;  %v891_v48 = vadd.bf16 1056980736, %v889_v45 }
 0x170   :  { %v892_v47 = vadd.bf16 1056980736, %v890_v46 }
 0x172   :  { %1060 = vmatprep.mubr.bf16.mxu1 %v892_v47 }
 0x173   :  { %1061 = vmatmul.mubr.bf16.vlgmr.msra.gmra.mxu1 %v891_v48 }
 0x233   :  { %v1236_v49 = vpop.f32.mrf.mxu1 }
 0x235   :  { %v1237_v50 = vpop.f32.mrf.mxu1 }
 0x236   :  { %v1238_v52 = vadd.f32 %v1237_v50, %v1236_v49 }
 0x237   :  { %v1239_v53 = vpop.f32.mrf.mxu1 }
 0x238   :  { %v1063_v54 = vadd.f32 %v1238_v52, %v1203_v51 }
 0x239   :  { %v1240_v55 = vpop.f32.mrf.mxu1 }
 0x23a   :  { %v1241_v56 = vadd.f32 %v1240_v55, %v1239_v53  ;;  %1069 = vmax.xlane.f32.xlu0 %v1063_v54 }
 0x23c   :  { %v1066_v57 = vadd.f32 %v1241_v56, %v1203_v51 }
 0x23e   :  { %1071 = vmax.xlane.f32.xlu0 %v1066_v57 }
 0x2c3   :  { %v1070_v58 = vpop.xlane.xlu0 %1069 }
 0x2c4   :  { %v1073_v59 = vsub.f32 %v1063_v54, %v1070_v58 }
 0x2c6   :  { %v1075_v60 = vmul.f32 1.442695, %v1073_v59 }
 0x2c7   :  { %v1072_v61 = vpop.xlane.xlu0 %1071 }
 0x2c8   :  { %1424 = vpow2.f32 %v1075_v60  ;;  %v1074_v62 = vsub.f32 %v1066_v57, %v1072_v61 }
 0x2ca   :  { %v1077_v63 = vmul.f32 1.442695, %v1074_v62 }
 0x2cc   :  { %1426 = vpow2.f32 %v1077_v63 }
 0x2d5   :  { %v1425_v0 = vpop.eup %1424 }
 0x2d6   :  { %1079 = vadd.xlane.f32.xlu1 %v1425_v0 }
 0x2d9   :  { %v1427_v1 = vpop.eup %1426 }
 0x2da   :  { %1081 = vadd.xlane.f32.xlu1 %v1427_v1 }
 0x35f   :  { %v1080_v2 = vpop.xlane.xlu1 %1079 }
 0x360   :  { %1428 = vrcp.f32 %v1080_v2 }
 0x363   :  { %v1082_v3 = vpop.xlane.xlu1 %1081 }
 0x364   :  { %1430 = vrcp.f32 %v1082_v3 }
 0x36d   :  { %v1429_v4 = vpop.eup %1428 }
 0x36e   :  { %v1087_v5 = vmul.f32 %v1429_v4, %v1425_v0 }
 0x370   :  { %1089 = vst [vmem:[%s1578_s5] sm:$0xff] %v1087_v5 }
 0x371   :  { %v1431_v6 = vpop.eup %1430 }
 0x372   :  { %v1088_v7 = vmul.f32 %v1431_v6, %v1427_v1 }
 0x374   :  { %1090 = vst [vmem:[%s1578_s5 + $0x8] sm:$0xff] %v1088_v7 }
 0x375   :  { %1095 = vsyncpa [#allocation3], 1 }

</bundles_post_ra>
